<compile_context>
chip_gen: v6e
topology: v6e:2x2x1
jax: 0.10.0
libtpu: 0.0.40
codegen_flags: <defaults>
</compile_context>

<pallas_src>
import math

import jax
import jax.numpy as jnp
from jax import lax
from jax.experimental import pallas as pl
from jax.experimental.pallas import tpu as pltpu


def _round_up(x, m):
    return ((x + m - 1) // m) * m


def _pick_time_tile(to, max_tile=512):
    """Smallest multiple-of-8 tile such that n_tiles * tile covers `to` with minimal waste."""
    n = -(-to // max_tile)
    tt = _round_up(-(-to // n), 8)
    return tt, n * tt


# ----------------------------------------------------------------------------
# Pallas kernel 1: first conv layer (Cin == 1), all 9 taps stacked on channels.
#   slab : (1, 1, tt, 16) f32   (tap order kh*3+kw, padded 9->16)
#   w    : (16, Cout) f32, b : (1, Cout) f32, out : (1, 1, tt, Cout) bf16
# ----------------------------------------------------------------------------
def _conv3x3s2_c1_kernel(s_ref, w_ref, b_ref, o_ref):
    acc = jnp.dot(s_ref[0, 0], w_ref[...], preferred_element_type=jnp.float32)
    acc = acc + b_ref[...]
    o_ref[0, 0] = jnp.maximum(acc, 0.0).astype(o_ref.dtype)


# ----------------------------------------------------------------------------
# Pallas kernel 2: conv layer with Cin > 1, column taps K-stacked on channels.
#   slabs : 3 x (1, 1, tt, 3*Cin) bf16   (row tap i; channel = kw*Cin + cin)
#   w     : (3, 3*Cin, Cout) bf16, b : (1, Cout) f32, out : (1, 1, tt, Cout) bf16
#   Pure dot chain; bias/ReLU only after the last dot (v7x MRB-friendly).
# ----------------------------------------------------------------------------
def _conv3x3s2_kstacked_kernel(s0_ref, s1_ref, s2_ref, w_ref, b_ref, o_ref):
    acc = jnp.dot(s0_ref[0, 0], w_ref[0], preferred_element_type=jnp.float32)
    acc = acc + jnp.dot(s1_ref[0, 0], w_ref[1], preferred_element_type=jnp.float32)
    acc = acc + jnp.dot(s2_ref[0, 0], w_ref[2], preferred_element_type=jnp.float32)
    acc = acc + b_ref[...]
    o_ref[0, 0] = jnp.maximum(acc, 0.0).astype(o_ref.dtype)


def conv3x3_s2_relu(h, wk, bk, *, max_time_tile=512):
    """One striding-subsampling conv layer (+bias+ReLU); frequency-major activations.

    h  : (B, F, T, Cin).
    wk : (16, Cout) f32 if Cin == 1 (all 9 taps stacked), else (3, 3*Cin, Cout) bf16.
    bk : (1, Cout) f32.
    Returns (out_padded (B, Fo, To_pad, Cout) bf16, To, tt); rows [To, To_pad) are garbage.
    """
    B, F, T, Cin = h.shape
    Cout = wk.shape[-1]
    Fo = (F - 1) // 2 + 1
    To = (T - 1) // 2 + 1
    tt, To_pad = _pick_time_tile(To, max_time_tile)
    first = (wk.ndim == 2)

    hp = jnp.pad(h, ((0, 0), (1, 1), (1, 1), (0, 0)))     # zero-pad both spatial dims

    def _row(i):      # time (kh) tap i, strided time slice
        return lax.slice_in_dim(hp, i, i + 2 * (To - 1) + 1, stride=2, axis=2)

    def _col(a, j):   # frequency (kw) tap j, strided frequency slice
        return lax.slice_in_dim(a, j, j + 2 * (Fo - 1) + 1, stride=2, axis=1)

    def _pad_t(a):
        if To_pad != To:
            a = jnp.pad(a, ((0, 0), (0, 0), (0, To_pad - To), (0, 0)))
        return a

    if first:
        assert Cin == 1
        taps = [_col(_row(i), j) for i in range(3) for j in range(3)]
        slab = jnp.concatenate(taps, axis=-1)                           # (B, Fo, To, 9)
        slab = jnp.pad(slab, ((0, 0), (0, 0), (0, 0), (0, 16 - 9)))
        slabs = [_pad_t(slab).astype(jnp.float32)]                      # keep f32 (accuracy)
        kc = 16
        kernel = _conv3x3s2_c1_kernel
        w_spec = pl.BlockSpec((16, Cout), lambda p, b, q: (0, 0))
    else:
        slabs = []
        for i in range(3):
            row = _row(i)
            s = jnp.concatenate([_col(row, j) for j in range(3)], axis=-1)  # (B, Fo, To, 3*Cin)
            slabs.append(_pad_t(s).astype(jnp.bfloat16))
        kc = 3 * Cin
        kernel = _conv3x3s2_kstacked_kernel
        w_spec = pl.BlockSpec((3, 3 * Cin, Cout), lambda p, b, q: (0, 0, 0))

    # Time-tile axis first: largest grid axis -> megacore sharding target on v7x.
    grid = (To_pad // tt, B, Fo)
    in_specs = [pl.BlockSpec((1, 1, tt, kc), lambda p, b, q: (b, q, p, 0)) for _ in slabs]
    in_specs += [w_spec, pl.BlockSpec((1, Cout), lambda p, b, q: (0, 0))]

    out = pl.pallas_call(
        kernel,
        out_shape=jax.ShapeDtypeStruct((B, Fo, To_pad, Cout), jnp.bfloat16),
        grid=grid,
        in_specs=in_specs,
        out_specs=pl.BlockSpec((1, 1, tt, Cout), lambda p, b, q: (b, q, p, 0)),
        compiler_params=pltpu.CompilerParams(
            dimension_semantics=("parallel", "parallel", "parallel"),
            vmem_limit_bytes=32 * 1024 * 1024),   # safe on v7x (64 MiB phys) too
        cost_estimate=pl.CostEstimate(
            flops=int(2 * B * Fo * To_pad * 9 * Cin * Cout),
            transcendentals=0,
            bytes_accessed=int(sum(s.size * s.dtype.itemsize for s in slabs)
                               + wk.size * wk.dtype.itemsize
                               + B * Fo * To_pad * Cout * 2)),
    )(*slabs, wk, bk)
    return out, To, tt


# ----------------------------------------------------------------------------
# Pallas kernel 3: Linear fused with the pre-Linear layout change.
#   Reads (1, 1, tm, C) blocks directly from the (B, F, T, C) conv output and reduces over the
#   F grid axis (last, "arbitrary") into an f32 VMEM accumulator. Weight is (F, C, N).
# ----------------------------------------------------------------------------
def _linear_over_f_kernel(x_ref, w_ref, b_ref, o_ref, acc_ref):
    @pl.when(pl.program_id(3) == 0)
    def _init():
        acc_ref[...] = jnp.zeros_like(acc_ref)

    acc_ref[...] += jnp.dot(x_ref[0, 0], w_ref[0], preferred_element_type=jnp.float32)

    @pl.when(pl.program_id(3) == pl.num_programs(3) - 1)
    def _finalize():
        o_ref[0] = (acc_ref[...] + b_ref[...]).astype(o_ref.dtype)


def pallas_linear_from_conv(h, w, b, *, tm, tn=512, out_dtype=jnp.float32):
    """h: (B, F, Tp, C) bf16 conv output (Tp % tm == 0); w: (F, C, N) bf16; b: (1, N) f32.
    Returns (B, Tp, N) with y[b, t, :] = sum_f h[b, f, t, :] @ w[f] + b."""
    B, F, Tp, C = h.shape
    Fw, Cw, N = w.shape
    assert (F, C) == (Fw, Cw) and b.shape == (1, N)
    assert Tp % tm == 0 and N % 128 == 0
    tn = min(tn, N)
    while N % tn != 0:
        tn -= 128

    grid = (B, Tp // tm, N // tn, F)     # reduction axis (F) last
    out = pl.pallas_call(
        _linear_over_f_kernel,
        out_shape=jax.ShapeDtypeStruct((B, Tp, N), out_dtype),
        grid=grid,
        in_specs=[
            pl.BlockSpec((1, 1, tm, C), lambda bb, i, j, f: (bb, f, i, 0)),
            pl.BlockSpec((1, C, tn), lambda bb, i, j, f: (f, 0, j)),
            pl.BlockSpec((1, tn), lambda bb, i, j, f: (0, j)),
        ],
        out_specs=pl.BlockSpec((1, tm, tn), lambda bb, i, j, f: (bb, i, j)),
        scratch_shapes=[pltpu.VMEM((tm, tn), jnp.float32)],
        compiler_params=pltpu.CompilerParams(
            dimension_semantics=("parallel", "parallel", "parallel", "arbitrary"),
            vmem_limit_bytes=32 * 1024 * 1024),
        cost_estimate=pl.CostEstimate(
            flops=int(2 * B * Tp * N * F * C),
            transcendentals=0,
            bytes_accessed=int(B * F * Tp * C * 2 + F * C * N * 2
                               + B * Tp * N * jnp.dtype(out_dtype).itemsize)),
    )(h, w, b)
    return out


# ----------------------------------------------------------------------------
# Length calculation (exact integer math, matches torch floor/ceil of float div)
# ----------------------------------------------------------------------------
def calc_length_jax(lengths, padding, kernel_size, stride, ceil_mode, repeat_num=1):
    add_pad = padding * 2 - kernel_size
    L = lengths.astype(jnp.int32)
    for _ in range(repeat_num):
        num = L + add_pad
        if ceil_mode:
            L = -((-num) // stride) + 1
        else:
            L = num // stride + 1
    return L.astype(jnp.int32)


def _calc_length_static(length, padding, kernel_size, stride, ceil_mode, repeat_num=1):
    add_pad = padding * 2 - kernel_size
    for _ in range(repeat_num):
        if ceil_mode:
            length = -((-(length + add_pad)) // stride) + 1
        else:
            length = (length + add_pad) // stride + 1
    return int(length)


# ----------------------------------------------------------------------------
# ConvSubsampling (subsampling="striding") in JAX + Pallas
# ----------------------------------------------------------------------------
class ConvSubsamplingStriding:
    def __init__(self, subsampling_factor, feat_in, feat_out, conv_channels, key):
        if subsampling_factor % 2 != 0:
            raise ValueError("Sampling factor should be a multiply of 2!")
        self._sampling_num = int(math.log(subsampling_factor, 2))
        self._padding, self._stride, self._kernel_size = 1, 2, 3
        self._ceil_mode = False
        self.feat_out = feat_out
        self.conv_channels = conv_channels

        # Channel padding: sublane multiple only (NOT 128) -> no c_pad/conv_channels HBM inflation.
        self.c_pad = _round_up(conv_channels, 8)
        self.n_pad = _round_up(feat_out, 128)

        self.f_out_len = _calc_length_static(
            feat_in, self._padding, self._kernel_size, self._stride,
            self._ceil_mode, self._sampling_num)

        # --- deterministic synthetic parameters in PyTorch layout -------------------
        self.conv_w_raw, self.conv_b_raw = [], []
        in_ch = 1
        for _ in range(self._sampling_num):
            key, k1, k2 = jax.random.split(key, 3)
            self.conv_w_raw.append(
                0.1 * jax.random.normal(k1, (conv_channels, in_ch, 3, 3), jnp.float32))
            self.conv_b_raw.append(
                0.1 * jax.random.normal(k2, (conv_channels,), jnp.float32))
            in_ch = conv_channels
        key, k1, k2 = jax.random.split(key, 3)
        lin_in = conv_channels * self.f_out_len
        self.lin_w_raw = 0.1 * jax.random.normal(k1, (feat_out, lin_in), jnp.float32)
        self.lin_b_raw = 0.1 * jax.random.normal(k2, (feat_out,), jnp.float32)

        # --- one-time preprocessing to kernel layouts (hoisted out of __call__) -----
        self.conv_w_k, self.conv_b_k = [], []
        for l in range(self._sampling_num):
            w = self.conv_w_raw[l]                               # (Cout, Cin, kh, kw)
            if l == 0:
                # all 9 taps stacked (row index kh*3+kw), padded 9->16, kept f32 for accuracy
                wk = jnp.pad(w.reshape(conv_channels, 9).T,
                             ((0, 16 - 9), (0, self.c_pad - conv_channels))
                             ).astype(jnp.float32)               # (16, c_pad)
            else:
                wk = jnp.transpose(w, (2, 3, 1, 0))              # (kh, kw, Cin, Cout)
                wk = jnp.pad(wk, ((0, 0), (0, 0),
                                  (0, self.c_pad - conv_channels),
                                  (0, self.c_pad - conv_channels)))
                wk = wk.reshape(3, 3 * self.c_pad, self.c_pad).astype(jnp.bfloat16)
            self.conv_w_k.append(wk)
            bk = jnp.pad(self.conv_b_raw[l], (0, self.c_pad - conv_channels))
            self.conv_b_k.append(bk.reshape(1, self.c_pad).astype(jnp.float32))

        # Linear weight laid out [f, c, n]: the PyTorch (b, t, c, f) flatten permutation is
        # folded into the weight so the (B, F, T, C) conv output is consumed directly.
        w_t = self.lin_w_raw.reshape(feat_out, conv_channels, self.f_out_len)
        w_perm = jnp.transpose(w_t, (2, 1, 0))                    # [f, c, n]
        w_perm = jnp.pad(w_perm, ((0, 0),
                                  (0, self.c_pad - conv_channels),
                                  (0, self.n_pad - feat_out)))
        self.lin_w_k = w_perm.astype(jnp.bfloat16)                # (f_out_len, c_pad, n_pad)
        self.lin_b_k = jnp.pad(self.lin_b_raw, (0, self.n_pad - feat_out)
                               ).reshape(1, self.n_pad).astype(jnp.float32)

    def __call__(self, x, lengths):
        # x: (B, T, feat_in), lengths: (B,) int
        lengths = calc_length_jax(lengths, self._padding, self._kernel_size,
                                  self._stride, self._ceil_mode, self._sampling_num)

        # Frequency-major conv-stack layout (B, F, T, C): slab staging is a pure strided slice
        # + channel concat every layer (no per-layer transposes).
        h = jnp.transpose(x, (0, 2, 1))[..., None]                # (B, F_in, T, 1) f32
        To = tt = None
        for l, (wk, bk) in enumerate(zip(self.conv_w_k, self.conv_b_k)):
            h, To, tt = conv3x3_s2_relu(h, wk, bk)
            if l < self._sampling_num - 1:
                # padded time rows hold relu(bias) garbage -> drop before the next layer's
                # staging (fused into its pad/slice by XLA).
                h = h[:, :, :To, :]
            # Last layer keeps the padded time extent: the Linear tiles with tm == tt so the
            # conv output is consumed directly; garbage rows are sliced off the final output.

        assert h.shape[1] == self.f_out_len and h.shape[3] == self.c_pad
        y = pallas_linear_from_conv(h, self.lin_w_k, self.lin_b_k, tm=tt)
        y = y[:, :To, :self.feat_out]
        return y, lengths


# ----------------------------------------------------------------------------
# Pure-XLA reference (PyTorch semantics, f32) for numerical validation
# ----------------------------------------------------------------------------
def reference_forward(module, x, lengths):
    lengths = calc_length_jax(lengths, module._padding, module._kernel_size,
                              module._stride, module._ceil_mode, module._sampling_num)
    h = x[:, None, :, :]                                  # (B, 1, T, F)  NCHW
    for w, b in zip(module.conv_w_raw, module.conv_b_raw):
        h = lax.conv_general_dilated(h, w, window_strides=(2, 2),
                                     padding=((1, 1), (1, 1)),
                                     dimension_numbers=("NCHW", "OIHW", "NCHW"))
        h = jnp.maximum(h + b[None, :, None, None], 0.0)
    B, C, T, F = h.shape
    hf = jnp.transpose(h, (0, 2, 1, 3)).reshape(B, T, C * F)
    y = hf @ module.lin_w_raw.T + module.lin_b_raw
    return y, lengths


if __name__ == "__main__":
    key = jax.random.PRNGKey(0)
    key, kx = jax.random.split(key)

    batch, seq, feat_in = 2, 16, 16
    feat_out, conv_channels, subsampling_factor = 32, 8, 4

    module = ConvSubsamplingStriding(subsampling_factor, feat_in, feat_out,
                                     conv_channels, key)

    x = jax.random.normal(kx, (batch, seq, feat_in), jnp.float32)
    lengths = jnp.array([16, 12], dtype=jnp.int32)

    fwd = jax.jit(lambda xx, ll: module(xx, ll))
    out, out_lengths = fwd(x, lengths)
    jax.block_until_ready(out)
    jax.block_until_ready(out_lengths)

    assert out.shape == (batch, 4, feat_out), out.shape
    assert out_lengths.shape == (batch,), out_lengths.shape

    # Numerical check against the pure-XLA reference (bf16 conv/Linear operands -> loose tol).
    ref, ref_lengths = reference_forward(module, x, lengths)
    ok = bool(jnp.all(jnp.abs(out - ref) <= 5e-2 + 5e-2 * jnp.abs(ref)))
    assert ok, "Pallas output mismatches reference"
    assert bool(jnp.all(out_lengths == ref_lengths))
    assert [int(v) for v in out_lengths] == [4, 3]

    print("KERNEL_OK")
</pallas_src>

<mosaic_0001>
module attributes {stable_mosaic.version = 11 : i64} {
  func.func @_conv3x3s2_kstacked_kernel(%arg0: i32, %arg1: i32, %arg2: i32, %arg3: memref<1x1x8x24xbf16, #tpu.memory_space<vmem>>, %arg4: memref<1x1x8x24xbf16, #tpu.memory_space<vmem>>, %arg5: memref<1x1x8x24xbf16, #tpu.memory_space<vmem>>, %arg6: memref<3x24x8xbf16, #tpu.memory_space<vmem>>, %arg7: memref<1x8xf32, #tpu.memory_space<vmem>>, %arg8: memref<1x1x8x8xbf16, #tpu.memory_space<vmem>>) attributes {dimension_semantics = [#tpu.dimension_semantics<parallel>, #tpu.dimension_semantics<parallel>, #tpu.dimension_semantics<parallel>], iteration_bounds = array<i64: 1, 2, 4>, scalar_prefetch = 0 : i64, scratch_operands = 0 : i64, tpu.core_type = #tpu.core_type<tc>, window_params = [{transform_indices = @transform_0, window_bounds = array<i64: 1, 1, 8, 24>}, {transform_indices = @transform_1, window_bounds = array<i64: 1, 1, 8, 24>}, {transform_indices = @transform_2, window_bounds = array<i64: 1, 1, 8, 24>}, {pipeline_mode = #tpu.pipeline_mode<synchronous>, transform_indices = @transform_3, window_bounds = array<i64: 3, 24, 8>}, {pipeline_mode = #tpu.pipeline_mode<synchronous>, transform_indices = @transform_4, window_bounds = array<i64: 1, 8>}, {transform_indices = @transform_5, window_bounds = array<i64: 1, 1, 8, 8>}]} {
    %c0 = arith.constant 0 : index
    %c0_0 = arith.constant 0 : index
    %c0_1 = arith.constant 0 : index
    %c0_2 = arith.constant 0 : index
    %0 = vector.load %arg3[%c0, %c0_0, %c0_1, %c0_2] : memref<1x1x8x24xbf16, #tpu.memory_space<vmem>>, vector<1x1x8x24xbf16>
    %1 = vector.shape_cast %0 : vector<1x1x8x24xbf16> to vector<8x24xbf16>
    %c0_3 = arith.constant 0 : index
    %c0_4 = arith.constant 0 : index
    %c0_5 = arith.constant 0 : index
    %2 = vector.load %arg6[%c0_3, %c0_4, %c0_5] : memref<3x24x8xbf16, #tpu.memory_space<vmem>>, vector<1x24x8xbf16>
    %3 = vector.shape_cast %2 : vector<1x24x8xbf16> to vector<24x8xbf16>
    %cst = arith.constant dense<0.000000e+00> : vector<8x8xf32>
    %4 = tpu.matmul %1, %3, %cst {dimension_numbers = #tpu.dot_dimension_numbers<[1], [0], [0], [1], [0, 0, 1, 1], [], []>} : vector<8x24xbf16>, vector<24x8xbf16>, vector<8x8xf32> -> vector<8x8xf32>
    %c0_6 = arith.constant 0 : index
    %c0_7 = arith.constant 0 : index
    %c0_8 = arith.constant 0 : index
    %c0_9 = arith.constant 0 : index
    %5 = vector.load %arg4[%c0_6, %c0_7, %c0_8, %c0_9] : memref<1x1x8x24xbf16, #tpu.memory_space<vmem>>, vector<1x1x8x24xbf16>
    %6 = vector.shape_cast %5 : vector<1x1x8x24xbf16> to vector<8x24xbf16>
    %c1 = arith.constant 1 : index
    %c0_10 = arith.constant 0 : index
    %c0_11 = arith.constant 0 : index
    %7 = vector.load %arg6[%c1, %c0_10, %c0_11] : memref<3x24x8xbf16, #tpu.memory_space<vmem>>, vector<1x24x8xbf16>
    %8 = vector.shape_cast %7 : vector<1x24x8xbf16> to vector<24x8xbf16>
    %cst_12 = arith.constant dense<0.000000e+00> : vector<8x8xf32>
    %9 = tpu.matmul %6, %8, %cst_12 {dimension_numbers = #tpu.dot_dimension_numbers<[1], [0], [0], [1], [0, 0, 1, 1], [], []>} : vector<8x24xbf16>, vector<24x8xbf16>, vector<8x8xf32> -> vector<8x8xf32>
    %10 = arith.addf %4, %9 : vector<8x8xf32>
    %c0_13 = arith.constant 0 : index
    %c0_14 = arith.constant 0 : index
    %c0_15 = arith.constant 0 : index
    %c0_16 = arith.constant 0 : index
    %11 = vector.load %arg5[%c0_13, %c0_14, %c0_15, %c0_16] : memref<1x1x8x24xbf16, #tpu.memory_space<vmem>>, vector<1x1x8x24xbf16>
    %12 = vector.shape_cast %11 : vector<1x1x8x24xbf16> to vector<8x24xbf16>
    %c2 = arith.constant 2 : index
    %c0_17 = arith.constant 0 : index
    %c0_18 = arith.constant 0 : index
    %13 = vector.load %arg6[%c2, %c0_17, %c0_18] : memref<3x24x8xbf16, #tpu.memory_space<vmem>>, vector<1x24x8xbf16>
    %14 = vector.shape_cast %13 : vector<1x24x8xbf16> to vector<24x8xbf16>
    %cst_19 = arith.constant dense<0.000000e+00> : vector<8x8xf32>
    %15 = tpu.matmul %12, %14, %cst_19 {dimension_numbers = #tpu.dot_dimension_numbers<[1], [0], [0], [1], [0, 0, 1, 1], [], []>} : vector<8x24xbf16>, vector<24x8xbf16>, vector<8x8xf32> -> vector<8x8xf32>
    %16 = arith.addf %10, %15 : vector<8x8xf32>
    %c0_20 = arith.constant 0 : index
    %c0_21 = arith.constant 0 : index
    %17 = vector.load %arg7[%c0_20, %c0_21] : memref<1x8xf32, #tpu.memory_space<vmem>>, vector<1x8xf32>
    %18 = vector.broadcast %17 : vector<1x8xf32> to vector<8x8xf32>
    %19 = arith.addf %16, %18 : vector<8x8xf32>
    %cst_22 = arith.constant 0.000000e+00 : f32
    %20 = vector.broadcast %cst_22 : f32 to vector<8x8xf32>
    %21 = arith.maximumf %19, %20 : vector<8x8xf32>
    %22 = arith.truncf %21 : vector<8x8xf32> to vector<8x8xbf16>
    %c0_23 = arith.constant 0 : index
    %c0_24 = arith.constant 0 : index
    %c0_25 = arith.constant 0 : index
    %c0_26 = arith.constant 0 : index
    %23 = vector.load %arg8[%c0_23, %c0_24, %c0_25, %c0_26] : memref<1x1x8x8xbf16, #tpu.memory_space<vmem>>, vector<1x1x8x8xbf16>
    %24 = vector.shape_cast %23 : vector<1x1x8x8xbf16> to vector<8x8xbf16>
    %25 = vector.shape_cast %22 : vector<8x8xbf16> to vector<1x1x8x8xbf16>
    tpu.vector_store %arg8[%c0_23, %c0_24, %c0_25, %c0_26], %25 {strides = array<i32>} : memref<1x1x8x8xbf16, #tpu.memory_space<vmem>>, vector<1x1x8x8xbf16>,
    return
  }
  func.func @transform_0(%arg0: i32, %arg1: i32, %arg2: i32) -> (i32, i32, i32, i32) {
    %c0_i32 = arith.constant 0 : i32
    %c0_i32_0 = arith.constant 0 : i32
    return %arg1, %arg2, %arg0, %c0_i32 : i32, i32, i32, i32
  }
  func.func @transform_1(%arg0: i32, %arg1: i32, %arg2: i32) -> (i32, i32, i32, i32) {
    %c0_i32 = arith.constant 0 : i32
    %c0_i32_0 = arith.constant 0 : i32
    return %arg1, %arg2, %arg0, %c0_i32 : i32, i32, i32, i32
  }
  func.func @transform_2(%arg0: i32, %arg1: i32, %arg2: i32) -> (i32, i32, i32, i32) {
    %c0_i32 = arith.constant 0 : i32
    %c0_i32_0 = arith.constant 0 : i32
    return %arg1, %arg2, %arg0, %c0_i32 : i32, i32, i32, i32
  }
  func.func @transform_3(%arg0: i32, %arg1: i32, %arg2: i32) -> (i32, i32, i32) {
    %c0_i32 = arith.constant 0 : i32
    %c0_i32_0 = arith.constant 0 : i32
    %c0_i32_1 = arith.constant 0 : i32
    %c0_i32_2 = arith.constant 0 : i32
    return %c0_i32, %c0_i32_0, %c0_i32_1 : i32, i32, i32
  }
  func.func @transform_4(%arg0: i32, %arg1: i32, %arg2: i32) -> (i32, i32) {
    %c0_i32 = arith.constant 0 : i32
    %c0_i32_0 = arith.constant 0 : i32
    %c0_i32_1 = arith.constant 0 : i32
    return %c0_i32, %c0_i32_0 : i32, i32
  }
  func.func @transform_5(%arg0: i32, %arg1: i32, %arg2: i32) -> (i32, i32, i32, i32) {
    %c0_i32 = arith.constant 0 : i32
    %c0_i32_0 = arith.constant 0 : i32
    return %arg1, %arg2, %arg0, %c0_i32 : i32, i32, i32, i32
  }
}

module attributes {stable_mosaic.version = 11 : i64} {
  func.func @_conv3x3s2_c1_kernel(%arg0: i32, %arg1: i32, %arg2: i32, %arg3: memref<1x1x8x16xf32, #tpu.memory_space<vmem>>, %arg4: memref<16x8xf32, #tpu.memory_space<vmem>>, %arg5: memref<1x8xf32, #tpu.memory_space<vmem>>, %arg6: memref<1x1x8x8xbf16, #tpu.memory_space<vmem>>) attributes {dimension_semantics = [#tpu.dimension_semantics<parallel>, #tpu.dimension_semantics<parallel>, #tpu.dimension_semantics<parallel>], iteration_bounds = array<i64: 1, 2, 8>, scalar_prefetch = 0 : i64, scratch_operands = 0 : i64, tpu.core_type = #tpu.core_type<tc>, window_params = [{transform_indices = @transform_0, window_bounds = array<i64: 1, 1, 8, 16>}, {pipeline_mode = #tpu.pipeline_mode<synchronous>, transform_indices = @transform_1, window_bounds = array<i64: 16, 8>}, {pipeline_mode = #tpu.pipeline_mode<synchronous>, transform_indices = @transform_2, window_bounds = array<i64: 1, 8>}, {transform_indices = @transform_3, window_bounds = array<i64: 1, 1, 8, 8>}]} {
    %c0 = arith.constant 0 : index
    %c0_0 = arith.constant 0 : index
    %c0_1 = arith.constant 0 : index
    %c0_2 = arith.constant 0 : index
    %0 = vector.load %arg3[%c0, %c0_0, %c0_1, %c0_2] : memref<1x1x8x16xf32, #tpu.memory_space<vmem>>, vector<1x1x8x16xf32>
    %1 = vector.shape_cast %0 : vector<1x1x8x16xf32> to vector<8x16xf32>
    %c0_3 = arith.constant 0 : index
    %c0_4 = arith.constant 0 : index
    %2 = vector.load %arg4[%c0_3, %c0_4] : memref<16x8xf32, #tpu.memory_space<vmem>>, vector<16x8xf32>
    %cst = arith.constant dense<0.000000e+00> : vector<8x8xf32>
    %3 = tpu.matmul %1, %2, %cst {dimension_numbers = #tpu.dot_dimension_numbers<[1], [0], [0], [1], [0, 0, 1, 1], [], []>} : vector<8x16xf32>, vector<16x8xf32>, vector<8x8xf32> -> vector<8x8xf32>
    %c0_5 = arith.constant 0 : index
    %c0_6 = arith.constant 0 : index
    %4 = vector.load %arg5[%c0_5, %c0_6] : memref<1x8xf32, #tpu.memory_space<vmem>>, vector<1x8xf32>
    %5 = vector.broadcast %4 : vector<1x8xf32> to vector<8x8xf32>
    %6 = arith.addf %3, %5 : vector<8x8xf32>
    %cst_7 = arith.constant 0.000000e+00 : f32
    %7 = vector.broadcast %cst_7 : f32 to vector<8x8xf32>
    %8 = arith.maximumf %6, %7 : vector<8x8xf32>
    %9 = arith.truncf %8 : vector<8x8xf32> to vector<8x8xbf16>
    %c0_8 = arith.constant 0 : index
    %c0_9 = arith.constant 0 : index
    %c0_10 = arith.constant 0 : index
    %c0_11 = arith.constant 0 : index
    %10 = vector.load %arg6[%c0_8, %c0_9, %c0_10, %c0_11] : memref<1x1x8x8xbf16, #tpu.memory_space<vmem>>, vector<1x1x8x8xbf16>
    %11 = vector.shape_cast %10 : vector<1x1x8x8xbf16> to vector<8x8xbf16>
    %12 = vector.shape_cast %9 : vector<8x8xbf16> to vector<1x1x8x8xbf16>
    tpu.vector_store %arg6[%c0_8, %c0_9, %c0_10, %c0_11], %12 {strides = array<i32>} : memref<1x1x8x8xbf16, #tpu.memory_space<vmem>>, vector<1x1x8x8xbf16>,
    return
  }
  func.func @transform_0(%arg0: i32, %arg1: i32, %arg2: i32) -> (i32, i32, i32, i32) {
    %c0_i32 = arith.constant 0 : i32
    %c0_i32_0 = arith.constant 0 : i32
    return %arg1, %arg2, %arg0, %c0_i32 : i32, i32, i32, i32
  }
  func.func @transform_1(%arg0: i32, %arg1: i32, %arg2: i32) -> (i32, i32) {
    %c0_i32 = arith.constant 0 : i32
    %c0_i32_0 = arith.constant 0 : i32
    %c0_i32_1 = arith.constant 0 : i32
    return %c0_i32, %c0_i32_0 : i32, i32
  }
  func.func @transform_2(%arg0: i32, %arg1: i32, %arg2: i32) -> (i32, i32) {
    %c0_i32 = arith.constant 0 : i32
    %c0_i32_0 = arith.constant 0 : i32
    %c0_i32_1 = arith.constant 0 : i32
    return %c0_i32, %c0_i32_0 : i32, i32
  }
  func.func @transform_3(%arg0: i32, %arg1: i32, %arg2: i32) -> (i32, i32, i32, i32) {
    %c0_i32 = arith.constant 0 : i32
    %c0_i32_0 = arith.constant 0 : i32
    return %arg1, %arg2, %arg0, %c0_i32 : i32, i32, i32, i32
  }
}

module attributes {stable_mosaic.version = 11 : i64} {
  func.func @_linear_over_f_kernel(%arg0: i32, %arg1: i32, %arg2: i32, %arg3: i32, %arg4: memref<1x1x8x8xbf16, #tpu.memory_space<vmem>>, %arg5: memref<1x8x128xbf16, #tpu.memory_space<vmem>>, %arg6: memref<1x128xf32, #tpu.memory_space<vmem>>, %arg7: memref<1x8x128xf32, #tpu.memory_space<vmem>>, %arg8: memref<8x128xf32, #tpu.memory_space<vmem>>) attributes {dimension_semantics = [#tpu.dimension_semantics<parallel>, #tpu.dimension_semantics<parallel>, #tpu.dimension_semantics<parallel>, #tpu.dimension_semantics<arbitrary>], iteration_bounds = array<i64: 2, 1, 1, 4>, scalar_prefetch = 0 : i64, scratch_operands = 1 : i64, tpu.core_type = #tpu.core_type<tc>, window_params = [{transform_indices = @transform_0, window_bounds = array<i64: 1, 1, 8, 8>}, {transform_indices = @transform_1, window_bounds = array<i64: 1, 8, 128>}, {transform_indices = @transform_2, window_bounds = array<i64: 1, 128>}, {transform_indices = @transform_3, window_bounds = array<i64: 1, 8, 128>}]} {
    %c0_i32 = arith.constant 0 : i32
    %0 = arith.cmpi eq, %arg3, %c0_i32 : i32
    %1 = arith.extui %0 : i1 to i32
    %c0_i32_0 = arith.constant 0 : i32
    %2 = arith.cmpi ne, %1, %c0_i32_0 : i32
    scf.if %2 {
      %cst_12 = arith.constant 0.000000e+00 : f32
      %14 = vector.broadcast %cst_12 : f32 to vector<8x128xf32>
      %c0_13 = arith.constant 0 : index
      %c0_14 = arith.constant 0 : index
      %15 = vector.load %arg8[%c0_13, %c0_14] : memref<8x128xf32, #tpu.memory_space<vmem>>, vector<8x128xf32>
      tpu.vector_store %arg8[%c0_13, %c0_14], %14 {strides = array<i32>} : memref<8x128xf32, #tpu.memory_space<vmem>>, vector<8x128xf32>,
    } else {
    }
    %c0 = arith.constant 0 : index
    %c0_1 = arith.constant 0 : index
    %3 = vector.load %arg8[%c0, %c0_1] : memref<8x128xf32, #tpu.memory_space<vmem>>, vector<8x128xf32>
    %c0_2 = arith.constant 0 : index
    %c0_3 = arith.constant 0 : index
    %c0_4 = arith.constant 0 : index
    %c0_5 = arith.constant 0 : index
    %4 = vector.load %arg4[%c0_2, %c0_3, %c0_4, %c0_5] : memref<1x1x8x8xbf16, #tpu.memory_space<vmem>>, vector<1x1x8x8xbf16>
    %5 = vector.shape_cast %4 : vector<1x1x8x8xbf16> to vector<8x8xbf16>
    %c0_6 = arith.constant 0 : index
    %c0_7 = arith.constant 0 : index
    %c0_8 = arith.constant 0 : index
    %6 = vector.load %arg5[%c0_6, %c0_7, %c0_8] : memref<1x8x128xbf16, #tpu.memory_space<vmem>>, vector<1x8x128xbf16>
    %7 = vector.shape_cast %6 : vector<1x8x128xbf16> to vector<8x128xbf16>
    %cst = arith.constant dense<0.000000e+00> : vector<8x128xf32>
    %8 = tpu.matmul %5, %7, %cst {dimension_numbers = #tpu.dot_dimension_numbers<[1], [0], [0], [1], [0, 0, 1, 1], [], []>} : vector<8x8xbf16>, vector<8x128xbf16>, vector<8x128xf32> -> vector<8x128xf32>
    %9 = arith.addf %3, %8 : vector<8x128xf32>
    %c0_9 = arith.constant 0 : index
    %c0_10 = arith.constant 0 : index
    %10 = vector.load %arg8[%c0_9, %c0_10] : memref<8x128xf32, #tpu.memory_space<vmem>>, vector<8x128xf32>
    tpu.vector_store %arg8[%c0_9, %c0_10], %9 {strides = array<i32>} : memref<8x128xf32, #tpu.memory_space<vmem>>, vector<8x128xf32>,
    %c3_i32 = arith.constant 3 : i32
    %11 = arith.cmpi eq, %arg3, %c3_i32 : i32
    %12 = arith.extui %11 : i1 to i32
    %c0_i32_11 = arith.constant 0 : i32
    %13 = arith.cmpi ne, %12, %c0_i32_11 : i32
    scf.if %13 {
      %c0_12 = arith.constant 0 : index
      %c0_13 = arith.constant 0 : index
      %14 = vector.load %arg8[%c0_12, %c0_13] : memref<8x128xf32, #tpu.memory_space<vmem>>, vector<8x128xf32>
      %c0_14 = arith.constant 0 : index
      %c0_15 = arith.constant 0 : index
      %15 = vector.load %arg6[%c0_14, %c0_15] : memref<1x128xf32, #tpu.memory_space<vmem>>, vector<1x128xf32>
      %16 = vector.broadcast %15 : vector<1x128xf32> to vector<8x128xf32>
      %17 = arith.addf %14, %16 : vector<8x128xf32>
      %c0_16 = arith.constant 0 : index
      %c0_17 = arith.constant 0 : index
      %c0_18 = arith.constant 0 : index
      %18 = vector.load %arg7[%c0_16, %c0_17, %c0_18] : memref<1x8x128xf32, #tpu.memory_space<vmem>>, vector<1x8x128xf32>
      %19 = vector.shape_cast %18 : vector<1x8x128xf32> to vector<8x128xf32>
      %20 = vector.shape_cast %17 : vector<8x128xf32> to vector<1x8x128xf32>
      tpu.vector_store %arg7[%c0_16, %c0_17, %c0_18], %20 {strides = array<i32>} : memref<1x8x128xf32, #tpu.memory_space<vmem>>, vector<1x8x128xf32>,
    } else {
    }
    return
  }
  func.func @transform_0(%arg0: i32, %arg1: i32, %arg2: i32, %arg3: i32) -> (i32, i32, i32, i32) {
    %c0_i32 = arith.constant 0 : i32
    %c0_i32_0 = arith.constant 0 : i32
    return %arg0, %arg3, %arg1, %c0_i32 : i32, i32, i32, i32
  }
  func.func @transform_1(%arg0: i32, %arg1: i32, %arg2: i32, %arg3: i32) -> (i32, i32, i32) {
    %c0_i32 = arith.constant 0 : i32
    %c0_i32_0 = arith.constant 0 : i32
    return %arg3, %c0_i32, %arg2 : i32, i32, i32
  }
  func.func @transform_2(%arg0: i32, %arg1: i32, %arg2: i32, %arg3: i32) -> (i32, i32) {
    %c0_i32 = arith.constant 0 : i32
    %c0_i32_0 = arith.constant 0 : i32
    return %c0_i32, %arg2 : i32, i32
  }
  func.func @transform_3(%arg0: i32, %arg1: i32, %arg2: i32, %arg3: i32) -> (i32, i32, i32) {
    %c0_i32 = arith.constant 0 : i32
    return %arg0, %arg1, %arg2 : i32, i32, i32
  }
}

</mosaic_0001>

<bundles_post_ra>
// kernel: _lambda_.3
= control target key start
LH: loop header
LB: loop body
LE: loop exit
PB: predicated region body
PF: predicated region fallthrough
CT: control target
= control target key end

     0   :  { %s545_s12 = smov 0   ;;  %s547_s13 = smov 0   ;;  %s605_s0 = inlined_call_operand.vmem [shape: f32[2,8,8,16], index: 0, kind: input, shape index: {}]   ;;  %s606_s1 = inlined_call_operand.vmem [shape: f32[16,8], index: 1, kind: input, shape index: {}]   ;;  %s607_s2 = inlined_call_operand.vmem [shape: f32[1,8], index: 2, kind: input, shape index: {}]   ;;  %s608_s3 = inlined_call_operand.vmem [shape: bf16[2,8,8,8], index: 3, kind: output, shape index: {}]  }
   0x1   :  { %s549_s14 = smov 0   ;;  %s551_s15 = smov 0  }
   0x2   :  { %s553_s16 = smov 0  }
   0x3 LB: > { %s25_s17 = sadd.s32 1, %s513_s14  ;;  %s28_s18 = sadd.s32 1, %s517_s15  ;;  %s521_s16 = sphi %s553_s16, %s13_s16   ;;  %s517_s15 = sphi %s551_s15, %s612_s15   ;;  %s513_s14 = sphi %s549_s14, %s611_s14   ;;  %s509_s13 = sphi %s547_s13, %s610_s13   ;;  %s505_s12 = sphi %s545_s12, %s609_s12  }
   0x4   : > { %p26_p0 = scmp.ge.s32.totalorder %s25_s17, 8  ;;  %p422_p1 = scmp.ge.s32.totalorder %s521_s16, 1 }
   0x5   : > { %p170_p2 = scmp.lt.s32.totalorder %s521_s16, 17 }
   0x6   : > { %s614_s17 = smov (%p26_p0, %s25_s17), 0  ;;  %s616_s18 = smov (!%p26_p0, %s28_s18), %s517_s15 }
   0x7   : > { %p171_p3 = pnand %p422_p1, %p170_p2  ;;  %p30_p4 = scmp.ge.s32.totalorder %s616_s18, 2 }
   0x8   : > { %p206_p5 = scmp.lt.s32.totalorder (!%p171_p3), %s509_s13, 1  ;;  %p208_p6 = scmp.lt.s32.totalorder (!%p171_p3), %s505_s12, 7 }
   0x9   : > { %s618_s18 = smov (%p30_p4, %s616_s18), 0  ;;  %174 = sbr.rel (%p171_p3) target bundleno = 220 (0xdc), region = 32 }
   0xe   : > { %v230_v0 = vld [vmem:[%s606_s1 + $0x8] sm:$0xff]  ;;  %v523_v1 = vmov 0.0   ;;  %v229_v2 = vld [vmem:[%s606_s1] sm:$0xff]  ;;  %vm524_vm0 = vmmov 0   ;;  %s620_s13 = smov (!%p206_p5, %s509_s13), 1  ;;  %s622_s12 = smov (!%p208_p6, %s505_s12), 7 }
   0xf   : > { %434 = vmatprep.subr.mxu0 %v523_v1  ;;  %438 = vmatprep.mubr.msk.f32.mxu0 %vm524_vm0, %v523_v1  ;;  %s423_s23 = sshll.u32 %s620_s13, 3  ;;  %vm238_vm1 = vcmask 130048   ;;  %v427_v4 = vld [vmem:[%s607_s2] ss:$0 sm:$0xff]  ;;  %vm314_vm2 = vcmask 60416  }
  0x10   : > { %435 = vmatpush3.msra.mxu0 %v230_v0  ;;  %s214_s24 = sadd.s32 %s423_s23, %s622_s12 }
  0x11   : > { %436 = vmatprep.subr.mxu0 %v523_v1  ;;  %s424_s25 = sshll.u32 %s214_s24, 3  ;;  %s426_s4 = sshll.u32 %s214_s24, 2 }
  0x12   : > { %437 = vmatpush3.msra.mxu0 %v229_v2  ;;  %s216_s28 = scalar_lea.vmem %s605_s0, %s424_s25  ;;  %s227_s7 = scalar_lea.vmem %s608_s3, %s426_s4 }
  0x13   : > { %v228_v3 = vld [vmem:[%s216_s28] sm:$0xff] }
  0x14   : > { %439 = vmatmul.mubr.msk.f32.vlgmr.msra.gmra.mxu0 %vm238_vm1, %v228_v3 }
  0xd4   : > { %v308_v5 = vpop.f32.mrf.mxu0 }
  0xd5   : > { %v309_v6 = vadd.f32 %v427_v4, %v308_v5 }
  0xd6   : > { %v440_v7 = vpop.f32.mrf.mxu0 }
  0xd7   : > { %v312_v8 = vmax.f32 %v309_v6, 0.0 }
  0xd9   : > { %v313_v9 = vpack.c.bf16 %v312_v8, %v312_v8 }
  0xdb   : > { %315 = vst.msk [vmem:[%s227_s7] sm:$0xf] %vm314_vm2, %v313_v9 }
  0xdc PF: > { %s13_s16 = sadd.s32 1, %s521_s16   ;;  %s609_s12 = smov %s513_s14 }
  0xdd   : > { %p10_p7 = scmp.ge.s32.totalorder %s13_s16, 18   ;;  %s610_s13 = smov %s517_s15 }
  0xde   : > { %s611_s14 = smov %s614_s17  ;;  %s612_s15 = smov %s618_s18 }
  0xdf   :  { %12 = sbr.rel (!%p10_p7) target bundleno = 3 (0x3), region = 62 }

// kernel: _lambda_.5
= control target key start
LH: loop header
LB: loop body
LE: loop exit
PB: predicated region body
PF: predicated region fallthrough
CT: control target
= control target key end

     0   :  { %s605_s12 = smov 0   ;;  %s607_s13 = smov 0   ;;  %s668_s0 = inlined_call_operand.vmem [shape: bf16[2,4,8,8], index: 0, kind: input, shape index: {}]   ;;  %s669_s1 = inlined_call_operand.vmem [shape: bf16[4,8,128], index: 1, kind: input, shape index: {}]   ;;  %s670_s2 = inlined_call_operand.vmem [shape: f32[1,128], index: 2, kind: input, shape index: {}]   ;;  %s671_s3 = inlined_call_operand.vmem [shape: f32[2,8,128], index: 3, kind: output, shape index: {}]  }
   0x1   :  { %s609_s14 = smov 0   ;;  %s611_s15 = smov 0  }
   0x2   :  { %s613_s16 = smov 0  }
   0x3 LB: > { %s28_s17 = sadd.s32 1, %s572_s14  ;;  %s39_s18 = sadd.s32 1, %s576_s15  ;;  %s580_s16 = sphi %s613_s16, %s13_s16   ;;  %s576_s15 = sphi %s611_s15, %s675_s15   ;;  %s572_s14 = sphi %s609_s14, %s674_s14   ;;  %s568_s13 = sphi %s607_s13, %s673_s13   ;;  %s564_s12 = sphi %s605_s12, %s672_s12  }
   0x4   : > { %p29_p0 = scmp.ge.s32.totalorder %s28_s17, 4  ;;  %p480_p1 = scmp.ge.s32.totalorder %s580_s16, 1 }
   0x5   : > { %p199_p2 = scmp.lt.s32.totalorder %s580_s16, 9 }
   0x6   : > { %s677_s17 = smov (%p29_p0, %s28_s17), 0  ;;  %s679_s18 = smov (!%p29_p0, %s39_s18), %s576_s15 }
   0x7   : > { %p200_p3 = pnand %p480_p1, %p199_p2  ;;  %p41_p4 = scmp.ge.s32.totalorder %s679_s18, 2 }
   0x8   : > { %p244_p5 = scmp.lt.s32.totalorder (!%p200_p3), %s568_s13, 1  ;;  %p246_p6 = scmp.lt.s32.totalorder (!%p200_p3), %s564_s12, 3 }
   0x9   : > { %s681_s18 = smov (%p41_p4, %s679_s18), 0  ;;  %203 = sbr.rel (%p200_p3) target bundleno = 238 (0xee), region = 32 }
   0xa   : > { %p485_p7 = scmp.ne.s32.totalorder (!%p200_p3), %s564_s12, 0 }
   0xe   : > { %s683_s13 = smov (!%p244_p5, %s568_s13), 1 }
   0xf   : > { %s247_s19 = scalar_select %p246_p6, %s564_s12, 3 }
  0x10   : > { %s481_s20 = sshll.u32 %s683_s13, 2  ;;  %s484_s21 = sshll.u32 %s683_s13, 3 }
  0x11   : > { %s252_s22 = sadd.s32 %s481_s20, %s247_s19  ;;  %s483_s23 = sshll.u32 %s247_s19, 2 }
  0x12   : > { %s482_s24 = sshll.u32 %s252_s22, 2  ;;  %s261_s27 = scalar_lea.vmem %s669_s1, %s483_s23 }
  0x13   : > { %s254_s30 = scalar_lea.vmem %s668_s0, %s482_s24  ;;  %s274_s6 = scalar_lea.vmem %s671_s3, %s484_s21 }
  0x14   : > { %279 = sbr.rel (%p485_p7) target bundleno = 27 (0x1b), region = 36 }
  0x19   : > { %v582_v0 = vmov 0.0  }
  0x1a   : > { %280 = vst [vmem:[#allocation2] sm:$0xff] %v582_v0 }
  0x1b PF: > { %v283_v1 = vld [vmem:[%s261_s27] sm:$0xf]  ;;  %vm288_vm0 = vcmask 1043456   ;;  %v583_v2 = vmov 0.0   ;;  %vm584_vm1 = vmmov 0   ;;  %vm284_vm2 = vcmask 64512  }
  0x1c   : > { %493 = vmatprep.subr.bf16.mxu0 %v583_v2  ;;  %v290_v3 = vsel %vm288_vm0, %v283_v1, 0  ;;  %495 = vmatprep.mubr.msk.bf16.mxu0 %vm584_vm1, %v583_v2  ;;  %v282_v4 = vld [vmem:[%s254_s30] sm:$0xf]  ;;  %p487_p8 = scmp.ne.s32.totalorder %s564_s12, 3 }
  0x1d   : > { %494 = vmatpush3.bf16.msra.mxu0 %v290_v3 }
  0x20   : > { %496 = vmatmul.mubr.msk.bf16.vlgmr.msra.gmra.mxu0 %vm284_vm2, %v282_v4 }
  0x21   : > { %v281_v5 = vld [vmem:[#allocation2] sm:$0xff] }
  0xe0   : > { %v326_v6 = vpop.f32.mrf.mxu0 }
  0xe1   : > { %v332_v7 = vadd.f32 %v326_v6, %v281_v5 }
  0xe2   : > { %v497_v8 = vpop.f32.mrf.mxu0  ;;  %337 = sbr.rel (%p487_p8) target bundleno = 238 (0xee), region = 40 }
  0xe3   : > { %333 = vst [vmem:[#allocation2] sm:$0xff] %v332_v7 }
  0xe4   : > { %v329_v9 = vpop.f32.mrf.mxu0 }
  0xe6   : > { %v498_v10 = vpop.f32.mrf.mxu0 }
  0xe7   : > { %v488_v12 = vld [vmem:[%s670_s2] ss:$0 sm:$0xff] }
  0xea   : > { %v338_v11 = vld [vmem:[#allocation2] sm:$0xff] }
  0xeb   : > { %v346_v13 = vadd.f32 %v488_v12, %v338_v11 }
  0xed   : > { %347 = vst [vmem:[%s274_s6] sm:$0xff] %v346_v13 }
  0xee PF: > { %s13_s16 = sadd.s32 1, %s580_s16   ;;  %s672_s12 = smov %s572_s14 }
  0xef   : > { %p10_p9 = scmp.ge.s32.totalorder %s13_s16, 10   ;;  %s673_s13 = smov %s576_s15 }
  0xf0   : > { %s674_s14 = smov %s677_s17  ;;  %s675_s15 = smov %s681_s18 }
  0xf1   :  { %12 = sbr.rel (!%p10_p9) target bundleno = 3 (0x3), region = 76 }

// kernel: _lambda_.4
= control target key start
LH: loop header
LB: loop body
LE: loop exit
PB: predicated region body
PF: predicated region fallthrough
CT: control target
= control target key end

     0   :  { %s889_s18 = smov 0   ;;  %s891_s19 = smov 0   ;;  %s987_s0 = inlined_call_operand.vmem [shape: bf16[2,4,8,24], index: 0, kind: input, shape index: {}]   ;;  %s988_s1 = inlined_call_operand.vmem [shape: bf16[2,4,8,24], index: 1, kind: input, shape index: {}]   ;;  %s989_s2 = inlined_call_operand.vmem [shape: bf16[2,4,8,24], index: 2, kind: input, shape index: {}]   ;;  %s990_s3 = inlined_call_operand.vmem [shape: bf16[3,24,8], index: 3, kind: input, shape index: {}]   ;;  %s991_s4 = inlined_call_operand.vmem [shape: f32[1,8], index: 4, kind: input, shape index: {}]   ;;  %s992_s5 = inlined_call_operand.vmem [shape: bf16[2,4,8,8], index: 5, kind: output, shape index: {}]  }
   0x1   :  { %s893_s20 = smov 0   ;;  %s895_s21 = smov 0  }
   0x2   :  { %s897_s22 = smov 0  }
   0x3 LB: > { %s27_s23 = sadd.s32 1, %s847_s20  ;;  %s30_s24 = sadd.s32 1, %s851_s21  ;;  %s855_s22 = sphi %s897_s22, %s15_s22   ;;  %s851_s21 = sphi %s895_s21, %s996_s21   ;;  %s847_s20 = sphi %s893_s20, %s995_s20   ;;  %s843_s19 = sphi %s891_s19, %s994_s19   ;;  %s839_s18 = sphi %s889_s18, %s993_s18  }
   0x4   : > { %p28_p0 = scmp.ge.s32.totalorder %s27_s23, 4  ;;  %p709_p1 = scmp.ge.s32.totalorder %s855_s22, 1 }
   0x5   : > { %p260_p2 = scmp.lt.s32.totalorder %s855_s22, 9 }
   0x6   : > { %s998_s23 = smov (%p28_p0, %s27_s23), 0  ;;  %s1000_s24 = smov (!%p28_p0, %s30_s24), %s851_s21 }
   0x7   : > { %p261_p3 = pnand %p709_p1, %p260_p2  ;;  %p32_p4 = scmp.ge.s32.totalorder %s1000_s24, 2 }
   0x8   : > { %p322_p5 = scmp.lt.s32.totalorder (!%p261_p3), %s843_s19, 1  ;;  %p324_p6 = scmp.lt.s32.totalorder (!%p261_p3), %s839_s18, 3 }
   0x9   : > { %s1002_s24 = smov (%p32_p4, %s1000_s24), 0  ;;  %264 = sbr.rel (%p261_p3) target bundleno = 233 (0xe9), region = 40 }
   0xe   : > { %v811_v0 = vld [vmem:[%s990_s3 + $0x14] ss:$0 sps:$4 sm:$0xff]   ;;  %vm389_vm0 = vcmask 1043456   ;;  %v857_v1 = vmov 0.0   ;;  %v812_v2 = vld [vmem:[%s990_s3 + $0x8] ss:$0 sps:$4 sm:$0xff]  }
   0xf   : > { %745 = vmatprep.subr.bf16.mxu0 %v857_v1  ;;  %753 = vmatprep.subr.bf16.mxu1 %v857_v1  ;;  %v391_v3 = vsel %vm389_vm0, %v811_v0, 0  ;;  %v446_v4 = vsel %vm389_vm0, %v812_v2, 0  ;;  %v813_v5 = vld [vmem:[%s990_s3 + $0xc] sm:$0xff]   ;;  %v814_v6 = vld [vmem:[%s990_s3] sm:$0xff]   ;;  %vm858_vm1 = vmmov 0   ;;  %s1004_s19 = smov (!%p322_p5, %s843_s19), 1 }
  0x10   : > { %746 = vmatpush3.bf16.msra.mxu0 %v391_v3  ;;  %754 = vmatpush3.bf16.msra.mxu1 %v446_v4  ;;  %s1006_s18 = smov (!%p324_p6, %s839_s18), 3  ;;  %v815_v7 = vld [vmem:[%s990_s3 + $0x20] ss:$0 sps:$4 sm:$0xff]   ;;  %s710_s10 = sshll.u32 %s1004_s19, 2  ;;  %vm385_vm2 = vcmask 195584   ;;  %v816_v11 = vld [vmem:[%s990_s3 + $0x18] sm:$0xff]  }
  0x11   : > { %747 = vmatprep.subr.bf16.mxu0 %v857_v1  ;;  %755 = vmatprep.subr.bf16.mxu1 %v857_v1  ;;  %s330_s11 = sadd.s32 %s710_s10, %s1006_s18  ;;  %v506_v8 = vsel %vm389_vm0, %v815_v7, 0  ;;  %v733_v23 = vld [vmem:[%s991_s4] ss:$0 sm:$0xff]  ;;  %vm559_vm3 = vcmask 60416  }
  0x12   : > { %749 = vmatprep.mubr.msk.bf16.mxu0 %vm858_vm1, %v857_v1  ;;  %757 = vmatprep.mubr.msk.bf16.mxu1 %vm858_vm1, %v857_v1  ;;  %s946_s12 = sshll.u32 %s330_s11, 2 }
  0x13   : > { %s343_s15 = scalar_lea.vmem %s988_s1, %s946_s12  ;;  %s332_s25 = scalar_lea.vmem %s987_s0, %s946_s12 }
  0x14   : > { %748 = vmatpush3.bf16.msra.mxu0 %v813_v5  ;;  %756 = vmatpush3.bf16.msra.mxu1 %v814_v6  ;;  %v371_v9 = vld [vmem:[%s343_s15] sm:$0xf]  ;;  %s354_s28 = scalar_lea.vmem %s989_s2, %s946_s12  ;;  %s365_s8 = scalar_lea.vmem %s992_s5, %s946_s12 }
  0x15   : > { %761 = vmatprep.subr.bf16.mxu0 %v857_v1  ;;  %v367_v10 = vld [vmem:[%s332_s25] sm:$0xf] }
  0x16   : > { %v488_v12 = vld [vmem:[%s354_s28] sm:$0xf] }
  0x17   : > { %750 = vmatmul.mubr.msk.bf16.vlgmr.msra.gmra.mxu0 %vm385_vm2, %v371_v9  ;;  %758 = vmatmul.mubr.msk.bf16.vlgmr.msra.gmra.mxu1 %vm385_vm2, %v367_v10 }
  0x18   : > { %762 = vmatpush3.bf16.msra.mxu0 %v506_v8  ;;  %765 = vmatprep.mubr.msk.bf16.mxu0 %vm858_vm1, %v857_v1 }
  0x19   : > { %763 = vmatprep.subr.bf16.mxu0 %v857_v1 }
  0x1c   : > { %764 = vmatpush3.bf16.msra.mxu0 %v816_v11 }
  0x1f   : > { %766 = vmatmul.mubr.msk.bf16.vlgmr.msra.gmra.mxu0 %vm385_vm2, %v488_v12 }
  0xd7   : > { %v427_v13 = vpop.f32.mrf.mxu0  ;;  %v482_v14 = vpop.f32.mrf.mxu1 }
  0xd8   : > { %v483_v21 = vadd.f32 %v482_v14, %v427_v13 }
  0xd9   : > { %v751_v15 = vpop.f32.mrf.mxu0  ;;  %v759_v16 = vpop.f32.mrf.mxu1 }
  0xdb   : > { %v430_v17 = vpop.f32.mrf.mxu0  ;;  %v485_v18 = vpop.f32.mrf.mxu1 }
  0xdd   : > { %v752_v19 = vpop.f32.mrf.mxu0  ;;  %v760_v20 = vpop.f32.mrf.mxu1 }
  0xdf   : > { %v542_v22 = vpop.f32.mrf.mxu0 }
  0xe0   : > { %v548_v24 = vadd.f32 %v542_v22, %v483_v21 }
  0xe1   : > { %v767_v25 = vpop.f32.mrf.mxu0 }
  0xe2   : > { %v556_v26 = vadd.f32 %v733_v23, %v548_v24 }
  0xe3   : > { %v545_v27 = vpop.f32.mrf.mxu0 }
  0xe4   : > { %v557_v28 = vmax.f32 %v556_v26, 0.0 }
  0xe5   : > { %v768_v29 = vpop.f32.mrf.mxu0 }
  0xe6   : > { %v558_v30 = vpack.c.bf16 %v557_v28, %v557_v28 }
  0xe8   : > { %560 = vst.msk [vmem:[%s365_s8] sm:$0xf] %vm559_vm3, %v558_v30 }
  0xe9 PF: > { %s15_s22 = sadd.s32 1, %s855_s22   ;;  %s993_s18 = smov %s847_s20 }
  0xea   : > { %p12_p7 = scmp.ge.s32.totalorder %s15_s22, 10   ;;  %s994_s19 = smov %s851_s21 }
  0xeb   : > { %s995_s20 = smov %s998_s23  ;;  %s996_s21 = smov %s1002_s24 }
  0xec   :  { %14 = sbr.rel (!%p12_p7) target bundleno = 3 (0x3), region = 78 }

</bundles_post_ra>
